<compile_context>
chip_gen: v7x
topology: tpu7x:2x2x1
jax: 0.10.0
libtpu: 0.0.40
codegen_flags: <defaults>
</compile_context>

<pallas_src>
import functools

import jax
import jax.numpy as jnp
import numpy as np
from jax.experimental import pallas as pl
from jax.experimental.pallas import tpu as pltpu


def _round_up(x, m):
    return (x + m - 1) // m * m


# ----------------------------------------------------------------------------
# Pallas kernel: tiled  out = [relu]( (x * scale) @ w + b )
#   grid = (M tiles [parallel], K tiles [arbitrary / reduction])
#   bf16 MXU operands, f32 accumulation in VMEM scratch.
# ----------------------------------------------------------------------------
def _linear_kernel(x_ref, w_ref, b_ref, o_ref, acc_ref, *, relu, scale):
    k = pl.program_id(1)

    @pl.when(k == 0)
    def _():
        acc_ref[...] = jnp.zeros_like(acc_ref)

    x = x_ref[...]
    if scale != 1.0:
        x = x.astype(jnp.float32) * scale
    x = x.astype(jnp.bfloat16)
    w = w_ref[...].astype(jnp.bfloat16)
    acc_ref[...] += jnp.dot(x, w, preferred_element_type=jnp.float32)

    @pl.when(k == pl.num_programs(1) - 1)
    def _():
        out = acc_ref[...] + b_ref[...]          # b is (1, N) f32, broadcasts
        if relu:
            out = jnp.maximum(out, 0.0)
        o_ref[...] = out.astype(o_ref.dtype)


def pallas_linear(x, w, b, *, relu=False, scale=1.0, out_dtype=jnp.bfloat16,
                  tm_max=512, tk_max=1024):
    """x: (M, K), w: (K, N), b: (N,) -> (M, N) in `out_dtype`."""
    M, K = x.shape
    Kw, N = w.shape
    assert K == Kw

    TM = min(tm_max, _round_up(M, 8))
    M_pad = _round_up(M, TM)
    if K <= tk_max:
        TK, K_pad = K, K
    else:
        TK, K_pad = tk_max, _round_up(K, tk_max)

    xp = x
    if (M_pad, K_pad) != (M, K):
        xp = jnp.pad(x, ((0, M_pad - M), (0, K_pad - K)))
    wp = w if K_pad == K else jnp.pad(w, ((0, K_pad - K), (0, 0)))
    b2 = b.reshape(1, N).astype(jnp.float32)

    grid = (M_pad // TM, K_pad // TK)
    flops = 2 * M_pad * K_pad * N
    bytes_accessed = int(xp.size * xp.dtype.itemsize
                         + wp.size * wp.dtype.itemsize
                         + b2.size * 4
                         + M_pad * N * jnp.dtype(out_dtype).itemsize)

    out = pl.pallas_call(
        functools.partial(_linear_kernel, relu=relu, scale=scale),
        out_shape=jax.ShapeDtypeStruct((M_pad, N), out_dtype),
        grid=grid,
        in_specs=[
            pl.BlockSpec((TM, TK), lambda i, k: (i, k)),
            pl.BlockSpec((TK, N), lambda i, k: (k, 0)),
            pl.BlockSpec((1, N), lambda i, k: (0, 0)),
        ],
        out_specs=pl.BlockSpec((TM, N), lambda i, k: (i, 0)),
        scratch_shapes=[pltpu.VMEM((TM, N), jnp.float32)],
        compiler_params=pltpu.CompilerParams(
            dimension_semantics=("parallel", "arbitrary"),
            vmem_limit_bytes=32 * 1024 * 1024,
        ),
        cost_estimate=pl.CostEstimate(flops=flops, transcendentals=0,
                                      bytes_accessed=bytes_accessed),
    )(xp, wp, b2)
    return out[:M] if M_pad != M else out


# ----------------------------------------------------------------------------
# Fused MLP head: relu(x@w1+b1) -> relu(@w2+b2) -> @w3+b3, all in one kernel.
# Intermediates stay in VMEM; output is a lane-dense 128-wide slab.
# ----------------------------------------------------------------------------
def _head_kernel(x_ref, w1_ref, b1_ref, w2_ref, b2_ref, w3_ref, b3_ref, o_ref):
    x = x_ref[...].astype(jnp.bfloat16)
    h = jnp.dot(x, w1_ref[...].astype(jnp.bfloat16),
                preferred_element_type=jnp.float32)
    h = jnp.maximum(h + b1_ref[...], 0.0).astype(jnp.bfloat16)
    h = jnp.dot(h, w2_ref[...].astype(jnp.bfloat16),
                preferred_element_type=jnp.float32)
    h = jnp.maximum(h + b2_ref[...], 0.0).astype(jnp.bfloat16)
    q = jnp.dot(h, w3_ref[...].astype(jnp.bfloat16),
                preferred_element_type=jnp.float32) + b3_ref[...]
    o_ref[...] = q.astype(o_ref.dtype)


def pallas_mlp_head(x, w1, b1, w2, b2, w3p, b3p, n_actions, *, tm_max=512):
    """Fused fc1/fc2/fc3. w3p/b3p are lane-padded to a multiple of 128 cols."""
    M, K = x.shape
    H = w1.shape[1]
    NP = w3p.shape[1]

    TM = min(tm_max, _round_up(M, 8))
    M_pad = _round_up(M, TM)
    xp = jnp.pad(x, ((0, M_pad - M), (0, 0))) if M_pad != M else x

    b1r = b1.reshape(1, H).astype(jnp.float32)
    b2r = b2.reshape(1, H).astype(jnp.float32)
    b3r = b3p.reshape(1, NP).astype(jnp.float32)

    flops = 2 * M_pad * (K * H + H * H + H * NP)
    bytes_accessed = int(xp.size * xp.dtype.itemsize
                         + w1.size * w1.dtype.itemsize
                         + w2.size * w2.dtype.itemsize
                         + w3p.size * w3p.dtype.itemsize
                         + (b1r.size + b2r.size + b3r.size) * 4
                         + M_pad * NP * 4)

    out = pl.pallas_call(
        _head_kernel,
        out_shape=jax.ShapeDtypeStruct((M_pad, NP), jnp.float32),
        grid=(M_pad // TM,),
        in_specs=[
            pl.BlockSpec((TM, K), lambda i: (i, 0)),
            pl.BlockSpec((K, H), lambda i: (0, 0)),
            pl.BlockSpec((1, H), lambda i: (0, 0)),
            pl.BlockSpec((H, H), lambda i: (0, 0)),
            pl.BlockSpec((1, H), lambda i: (0, 0)),
            pl.BlockSpec((H, NP), lambda i: (0, 0)),
            pl.BlockSpec((1, NP), lambda i: (0, 0)),
        ],
        out_specs=pl.BlockSpec((TM, NP), lambda i: (i, 0)),
        compiler_params=pltpu.CompilerParams(
            dimension_semantics=("parallel",),
            vmem_limit_bytes=32 * 1024 * 1024,
        ),
        cost_estimate=pl.CostEstimate(flops=flops, transcendentals=0,
                                      bytes_accessed=bytes_accessed),
    )(xp, w1, b1r, w2, b2r, w3p, b3r)
    return out[:M, :n_actions]


# ----------------------------------------------------------------------------
# im2col glue in NHWC (layout only, no compute) — columns ordered (kh, kw, c),
# matching the host-side (kh, kw, in_c, out_c) weight flattening. No output
# transpose needed: the conv result stays NHWC.
# ----------------------------------------------------------------------------
def im2col_nhwc(x_nhwc, k, stride):
    n, h, w, c = x_nhwc.shape
    ho = (h - k) // stride + 1
    wo = (w - k) // stride + 1
    patches = []
    for i in range(k):
        for j in range(k):
            patches.append(
                x_nhwc[:, i:i + stride * ho:stride, j:j + stride * wo:stride, :]
            )
    cols = jnp.stack(patches, axis=3)               # (n, ho, wo, k*k, c)
    cols = cols.reshape(n * ho * wo, k * k * c)
    return cols, ho, wo


def conv2d_pallas_nhwc(x_nhwc, w_flat, b, k, stride, *, relu, scale=1.0):
    # TODO(synk): at realistic batch/spatial sizes, gather the k*k shifted rows
    # HBM->VMEM inside the kernel (memory_space=pl.ANY + make_async_copy) so
    # the im2col matrix is never materialized in HBM.
    n = x_nhwc.shape[0]
    out_c = w_flat.shape[1]
    cols, ho, wo = im2col_nhwc(x_nhwc, k, stride)
    y = pallas_linear(cols, w_flat, b, relu=relu, scale=scale,
                      out_dtype=jnp.bfloat16)
    return y.reshape(n, ho, wo, out_c)              # NHWC, no transpose back


# ----------------------------------------------------------------------------
# Parameters
# ----------------------------------------------------------------------------
def conv_out_hw(h, w):
    h1, w1 = (h - 8) // 4 + 1, (w - 8) // 4 + 1
    h2, w2 = (h1 - 4) // 2 + 1, (w1 - 4) // 2 + 1
    h3, w3 = (h2 - 3) // 1 + 1, (w2 - 3) // 1 + 1
    return h3, w3


def init_params(key, obs_channels, h, w, n_actions):
    """Synthetic params in the torch layout (OIHW conv, NCHW-flatten fc1)."""
    def dense(key, fan_in, shape, gain=np.sqrt(2.0)):
        return gain * jax.random.normal(key, shape, jnp.float32) / np.sqrt(fan_in)

    ks = jax.random.split(key, 6)
    h3, w3 = conv_out_hw(h, w)
    flat = 64 * h3 * w3
    return {
        "conv1_w": dense(ks[0], obs_channels * 8 * 8, (32, obs_channels, 8, 8)),
        "conv1_b": jnp.zeros((32,), jnp.float32),
        "conv2_w": dense(ks[1], 32 * 4 * 4, (64, 32, 4, 4)),
        "conv2_b": jnp.zeros((64,), jnp.float32),
        "conv3_w": dense(ks[2], 64 * 3 * 3, (64, 64, 3, 3)),
        "conv3_b": jnp.zeros((64,), jnp.float32),
        "fc1_w": dense(ks[3], flat, (flat, 128)),
        "fc1_b": jnp.zeros((128,), jnp.float32),
        "fc2_w": dense(ks[4], 128, (128, 128)),
        "fc2_b": jnp.zeros((128,), jnp.float32),
        "fc3_w": dense(ks[5], 128, (128, n_actions), gain=1.0),
        "fc3_b": jnp.zeros((n_actions,), jnp.float32),
    }


def prepare_params(params, h, w, n_actions):
    """One-time host-side prep: (kh,kw,c) conv-weight flatten, NHWC fc1 reorder,
    bf16 weight cast, fc3 lane-padded to a 128-wide output slab."""
    def conv_flat(w_oihw):
        o, i, kh, kw = w_oihw.shape
        return (w_oihw.transpose(2, 3, 1, 0)         # (kh, kw, in_c, out_c)
                .reshape(kh * kw * i, o).astype(jnp.bfloat16))

    h3, w3 = conv_out_hw(h, w)
    # fc1 rows: torch flattens (C, H, W); our conv output flattens (H, W, C).
    fc1 = (params["fc1_w"].reshape(64, h3, w3, 128)
           .transpose(1, 2, 0, 3).reshape(h3 * w3 * 64, 128))
    head_pad = max(128, _round_up(n_actions, 128))
    fc3_w = jnp.pad(params["fc3_w"], ((0, 0), (0, head_pad - n_actions)))
    fc3_b = jnp.pad(params["fc3_b"], (0, head_pad - n_actions))
    return {
        "conv1_w": conv_flat(params["conv1_w"]), "conv1_b": params["conv1_b"],
        "conv2_w": conv_flat(params["conv2_w"]), "conv2_b": params["conv2_b"],
        "conv3_w": conv_flat(params["conv3_w"]), "conv3_b": params["conv3_b"],
        "fc1_w": fc1.astype(jnp.bfloat16), "fc1_b": params["fc1_b"],
        "fc2_w": params["fc2_w"].astype(jnp.bfloat16), "fc2_b": params["fc2_b"],
        "fc3_w": fc3_w.astype(jnp.bfloat16), "fc3_b": fc3_b,
    }


# ----------------------------------------------------------------------------
# QNetwork forward
# ----------------------------------------------------------------------------
def qnetwork_forward(kparams, x_nchw, n_actions):
    """Equivalent of QNetwork.forward: critic(x / 255.0) -> (B, n_actions) f32."""
    n = x_nchw.shape[0]
    x = jnp.transpose(x_nchw, (0, 2, 3, 1))          # one-time NCHW -> NHWC
    y = conv2d_pallas_nhwc(x, kparams["conv1_w"], kparams["conv1_b"], 8, 4,
                           relu=True, scale=1.0 / 255.0)   # /255 fused here
    y = conv2d_pallas_nhwc(y, kparams["conv2_w"], kparams["conv2_b"], 4, 2,
                           relu=True)
    y = conv2d_pallas_nhwc(y, kparams["conv3_w"], kparams["conv3_b"], 3, 1,
                           relu=True)
    y = y.reshape(n, -1)                             # NHWC flatten (matches fc1 prep)
    q = pallas_mlp_head(y, kparams["fc1_w"], kparams["fc1_b"],
                        kparams["fc2_w"], kparams["fc2_b"],
                        kparams["fc3_w"], kparams["fc3_b"], n_actions)
    return q


# ----------------------------------------------------------------------------
# Pure-JAX f32 reference (torch-layout params) for a sanity check
# ----------------------------------------------------------------------------
def qnetwork_forward_ref(params, x_nchw):
    dn = ("NCHW", "OIHW", "NCHW")
    y = x_nchw / 255.0
    y = jax.lax.conv_general_dilated(y, params["conv1_w"], (4, 4), "VALID",
                                     dimension_numbers=dn)
    y = jnp.maximum(y + params["conv1_b"][None, :, None, None], 0.0)
    y = jax.lax.conv_general_dilated(y, params["conv2_w"], (2, 2), "VALID",
                                     dimension_numbers=dn)
    y = jnp.maximum(y + params["conv2_b"][None, :, None, None], 0.0)
    y = jax.lax.conv_general_dilated(y, params["conv3_w"], (1, 1), "VALID",
                                     dimension_numbers=dn)
    y = jnp.maximum(y + params["conv3_b"][None, :, None, None], 0.0)
    y = y.reshape(x_nchw.shape[0], -1)
    y = jnp.maximum(y @ params["fc1_w"] + params["fc1_b"], 0.0)
    y = jnp.maximum(y @ params["fc2_w"] + params["fc2_b"], 0.0)
    return y @ params["fc3_w"] + params["fc3_b"]


if __name__ == "__main__":
    # Small Atari-like setup: batch=2, 4 stacked frames, 36x36 spatial, 6 actions.
    # (36 -> conv1 -> 8 -> conv2 -> 3 -> conv3 -> 1, so flat dim = 64.)
    B, C, H, W = 2, 4, 36, 36
    N_ACTIONS = 6

    key = jax.random.PRNGKey(0)
    k_params, k_x = jax.random.split(key)
    params = init_params(k_params, C, H, W, N_ACTIONS)
    kparams = prepare_params(params, H, W, N_ACTIONS)

    # Synthetic uint8-range pixel observations, as floats (forward does x/255).
    x = jax.random.uniform(k_x, (B, C, H, W), jnp.float32, 0.0, 255.0)

    q = jax.block_until_ready(qnetwork_forward(kparams, x, N_ACTIONS))
    q_ref = jax.block_until_ready(qnetwork_forward_ref(params, x))

    # bf16 MXU operands with f32 accumulation -> loosened tolerance vs f32 ref.
    np.testing.assert_allclose(np.asarray(q), np.asarray(q_ref),
                               rtol=5e-2, atol=5e-2)
    assert q.shape == (B, N_ACTIONS) and q.dtype == jnp.float32
    print("KERNEL_OK")
</pallas_src>

<mosaic_0001>
module attributes {stable_mosaic.version = 11 : i64} {
  func.func @_linear_kernel(%arg0: i32, %arg1: i32, %arg2: memref<128x256xf32, #tpu.memory_space<vmem>>, %arg3: memref<256x32xbf16, #tpu.memory_space<vmem>>, %arg4: memref<1x32xf32, #tpu.memory_space<vmem>>, %arg5: memref<128x32xbf16, #tpu.memory_space<vmem>>, %arg6: memref<128x32xf32, #tpu.memory_space<vmem>>) attributes {dimension_semantics = [#tpu.dimension_semantics<parallel>, #tpu.dimension_semantics<arbitrary>], iteration_bounds = array<i64: 1, 1>, scalar_prefetch = 0 : i64, scratch_operands = 1 : i64, tpu.core_type = #tpu.core_type<tc>, window_params = [{transform_indices = @transform_0, window_bounds = array<i64: 128, 256>}, {transform_indices = @transform_1, window_bounds = array<i64: 256, 32>}, {pipeline_mode = #tpu.pipeline_mode<synchronous>, transform_indices = @transform_2, window_bounds = array<i64: 1, 32>}, {transform_indices = @transform_3, window_bounds = array<i64: 128, 32>}]} {
    %c0_i32 = arith.constant 0 : i32
    %0 = arith.cmpi eq, %arg1, %c0_i32 : i32
    %1 = arith.extui %0 : i1 to i32
    %c0_i32_0 = arith.constant 0 : i32
    %2 = arith.cmpi ne, %1, %c0_i32_0 : i32
    scf.if %2 {
      %cst_11 = arith.constant 0.000000e+00 : f32
      %15 = vector.broadcast %cst_11 : f32 to vector<128x32xf32>
      %c0_12 = arith.constant 0 : index
      %c0_13 = arith.constant 0 : index
      %16 = vector.load %arg6[%c0_12, %c0_13] : memref<128x32xf32, #tpu.memory_space<vmem>>, vector<128x32xf32>
      tpu.vector_store %arg6[%c0_12, %c0_13], %15 {strides = array<i32>} : memref<128x32xf32, #tpu.memory_space<vmem>>, vector<128x32xf32>,
    } else {
    }
    %c0 = arith.constant 0 : index
    %c0_1 = arith.constant 0 : index
    %3 = vector.load %arg2[%c0, %c0_1] : memref<128x256xf32, #tpu.memory_space<vmem>>, vector<128x256xf32>
    %cst = arith.constant 0.00392156886 : f32
    %4 = vector.broadcast %cst : f32 to vector<128x256xf32>
    %5 = arith.mulf %3, %4 : vector<128x256xf32>
    %6 = arith.truncf %5 : vector<128x256xf32> to vector<128x256xbf16>
    %c0_2 = arith.constant 0 : index
    %c0_3 = arith.constant 0 : index
    %7 = vector.load %arg3[%c0_2, %c0_3] : memref<256x32xbf16, #tpu.memory_space<vmem>>, vector<256x32xbf16>
    %c0_4 = arith.constant 0 : index
    %c0_5 = arith.constant 0 : index
    %8 = vector.load %arg6[%c0_4, %c0_5] : memref<128x32xf32, #tpu.memory_space<vmem>>, vector<128x32xf32>
    %cst_6 = arith.constant dense<0.000000e+00> : vector<128x32xf32>
    %9 = tpu.matmul %6, %7, %cst_6 {dimension_numbers = #tpu.dot_dimension_numbers<[1], [0], [0], [1], [0, 0, 1, 1], [], []>} : vector<128x256xbf16>, vector<256x32xbf16>, vector<128x32xf32> -> vector<128x32xf32>
    %10 = arith.addf %8, %9 : vector<128x32xf32>
    %c0_7 = arith.constant 0 : index
    %c0_8 = arith.constant 0 : index
    %11 = vector.load %arg6[%c0_7, %c0_8] : memref<128x32xf32, #tpu.memory_space<vmem>>, vector<128x32xf32>
    tpu.vector_store %arg6[%c0_7, %c0_8], %10 {strides = array<i32>} : memref<128x32xf32, #tpu.memory_space<vmem>>, vector<128x32xf32>,
    %c0_i32_9 = arith.constant 0 : i32
    %12 = arith.cmpi eq, %arg1, %c0_i32_9 : i32
    %13 = arith.extui %12 : i1 to i32
    %c0_i32_10 = arith.constant 0 : i32
    %14 = arith.cmpi ne, %13, %c0_i32_10 : i32
    scf.if %14 {
      %c0_11 = arith.constant 0 : index
      %c0_12 = arith.constant 0 : index
      %15 = vector.load %arg6[%c0_11, %c0_12] : memref<128x32xf32, #tpu.memory_space<vmem>>, vector<128x32xf32>
      %c0_13 = arith.constant 0 : index
      %c0_14 = arith.constant 0 : index
      %16 = vector.load %arg4[%c0_13, %c0_14] : memref<1x32xf32, #tpu.memory_space<vmem>>, vector<1x32xf32>
      %17 = vector.broadcast %16 : vector<1x32xf32> to vector<128x32xf32>
      %18 = arith.addf %15, %17 : vector<128x32xf32>
      %cst_15 = arith.constant 0.000000e+00 : f32
      %19 = vector.broadcast %cst_15 : f32 to vector<128x32xf32>
      %20 = arith.maximumf %18, %19 : vector<128x32xf32>
      %21 = arith.truncf %20 : vector<128x32xf32> to vector<128x32xbf16>
      %c0_16 = arith.constant 0 : index
      %c0_17 = arith.constant 0 : index
      %22 = vector.load %arg5[%c0_16, %c0_17] : memref<128x32xbf16, #tpu.memory_space<vmem>>, vector<128x32xbf16>
      tpu.vector_store %arg5[%c0_16, %c0_17], %21 {strides = array<i32>} : memref<128x32xbf16, #tpu.memory_space<vmem>>, vector<128x32xbf16>,
    } else {
    }
    return
  }
  func.func @transform_0(%arg0: i32, %arg1: i32) -> (i32, i32) {
    %c0_i32 = arith.constant 0 : i32
    return %arg0, %arg1 : i32, i32
  }
  func.func @transform_1(%arg0: i32, %arg1: i32) -> (i32, i32) {
    %c0_i32 = arith.constant 0 : i32
    %c0_i32_0 = arith.constant 0 : i32
    return %arg1, %c0_i32 : i32, i32
  }
  func.func @transform_2(%arg0: i32, %arg1: i32) -> (i32, i32) {
    %c0_i32 = arith.constant 0 : i32
    %c0_i32_0 = arith.constant 0 : i32
    %c0_i32_1 = arith.constant 0 : i32
    return %c0_i32, %c0_i32_0 : i32, i32
  }
  func.func @transform_3(%arg0: i32, %arg1: i32) -> (i32, i32) {
    %c0_i32 = arith.constant 0 : i32
    %c0_i32_0 = arith.constant 0 : i32
    return %arg0, %c0_i32 : i32, i32
  }
}

</mosaic_0001>

<bundles_post_ra>
// kernel: tpu_custom_call.1
= control target key start
LH: loop header
LB: loop body
LE: loop exit
PB: predicated region body
PF: predicated region fallthrough
CT: control target
= control target key end

     0   :  { %8 = vsyncpa [#allocation4], 0  ;;  %s721_s12 = smov [#allocation3]   ;;  %s922_s0 = inlined_call_operand.hbm [shape: f32[128,256], index: 0, kind: input, shape index: {}]   ;;  %s923_s1 = inlined_call_operand.vmem [shape: bf16[256,32], index: 1, kind: input, shape index: {}]   ;;  %s924_s2 = inlined_call_operand.vmem [shape: f32[1,32], index: 2, kind: input, shape index: {}]   ;;  %s925_s3 = inlined_call_operand.vmem [shape: bf16[128,32], index: 3, kind: output, shape index: {}]  }
   0x1   :  { %s14_s13 = sshll.u32 %s721_s12, 4  ;;  %s697_s16 = scalar_lea.hbm %s922_s0, 4096  ;;  %s15_s13 = int_to_ptr.vmem [resolvable:$true] %s14_s13 }
   0x2   :  { %p698_p0 = scmp.ne.s32.totalorder %s922_s0, %s697_s16  ;;  %p701_p1 = scmp.lt.u32.totalorder %s697_s16, %s922_s0 }
   0x4   :  { %p703_p2 = pnand %p701_p1, %p698_p0 }
   0x6   :  { %706 = shalt.err (!%p703_p2)
}
   0x7   :  { %s707_s21 = scalar_lea.vmem %s15_s13, 4096  ;;  %p712_p4 = scmp.lt.s32.totalorder %s15_s13, %s15_s13 }
   0x8   :  { %p708_p3 = scmp.ne.s32.totalorder %s15_s13, %s707_s21  ;;  %p713_p5 = scmp.lt.s32.totalorder %s707_s21, %s707_s21 }
   0xa   :  { %p714_p6 = por %p713_p5, %p712_p4 }
   0xc   :  { %p715_p7 = pnand %p714_p6, %p708_p3 }
   0xe   :  { %718 = shalt.err (!%p715_p7)
}
   0xf   :  { %s722_s22 = smov 256   ;;  %s723_s23 = smov 16  }
  0x10   :  { %20 = dma.hbm_to_vmem [thread:$0]  %s922_s0, 4096, %s15_s13, [#allocation4], %s722_s22, %s722_s22, %s723_s23  }
  0x11   :  { %719 = dma.done.wait [#allocation4], 4096  }
  0x12   :  { %720 = vsyncadd [#allocation4], 4294963200  ;;  %v681_v0 = vld [vmem:[%s923_s1 + $0x40] sm:$0xff]   ;;  %v683_v2 = vld [vmem:[%s923_s1 + $0x48] sm:$0xff]   ;;  %vm33_vm0 = vcmask 261120   ;;  %vm526_vm1 = vcmask 257024  }
  0x13   :  { %v682_v1 = vld [vmem:[%s923_s1] sm:$0xff]   ;;  %597 = vmatprep.subr.bf16.mxu0 %v681_v0  ;;  %661 = vmatprep.subr.bf16.mxu1 %v681_v0  ;;  %v684_v3 = vld [vmem:[%s923_s1 + $0x8] sm:$0xff]   ;;  %v685_v4 = vld [vmem:[%s923_s1 + $0x50] sm:$0xff]  }
  0x14   :  { %598 = vmatpush3.bf16.msra.mxu0 %v682_v1  ;;  %669 = vmatpush3.bf16.msra.mxu1 %v682_v1  ;;  %v686_v5 = vld [vmem:[%s923_s1 + $0x10] sm:$0xff]   ;;  %v687_v6 = vld [vmem:[%s923_s1 + $0x58] sm:$0xff]   ;;  %v689_v8 = vld [vmem:[%s923_s1 + $0x60] sm:$0xff]  }
  0x15   :  { %599 = vmatprep.subr.bf16.mxu0 %v683_v2  ;;  %662 = vmatprep.subr.bf16.mxu1 %v683_v2  ;;  %v688_v7 = vld [vmem:[%s923_s1 + $0x18] sm:$0xff]   ;;  %v690_v9 = vld [vmem:[%s923_s1 + $0x20] sm:$0xff]   ;;  %v691_v10 = vld [vmem:[%s923_s1 + $0x68] sm:$0xff]  }
  0x16   :  { %v51_v11 = vld [vmem:[#allocation3 + $0x8] sm:$0xff]  ;;  %v53_v12 = vld [vmem:[#allocation3 + $0x18] sm:$0xff]  ;;  %v693_v21 = vld [vmem:[%s923_s1 + $0x70] sm:$0xff]  }
  0x17   :  { %v67_v13 = vld [vmem:[#allocation3 + $0x88] sm:$0xff]  ;;  %v83_v14 = vmul.f32 0.003921569, %v51_v11  ;;  %v85_v15 = vmul.f32 0.003921569, %v53_v12  ;;  %v69_v16 = vld [vmem:[#allocation3 + $0x98] sm:$0xff] }
  0x18   :  { %600 = vmatpush3.bf16.msra.mxu0 %v684_v3  ;;  %670 = vmatpush3.bf16.msra.mxu1 %v684_v3  ;;  %v99_v17 = vmul.f32 0.003921569, %v67_v13  ;;  %v101_v18 = vmul.f32 0.003921569, %v69_v16  ;;  %v692_v19 = vld [vmem:[%s923_s1 + $0x28] sm:$0xff]   ;;  %v694_v23 = vld [vmem:[%s923_s1 + $0x30] sm:$0xff]  }
  0x19   :  { %601 = vmatprep.subr.bf16.mxu0 %v685_v4  ;;  %663 = vmatprep.subr.bf16.mxu1 %v685_v4  ;;  %v115_v20 = vpack.c.bf16 %v85_v15, %v83_v14  ;;  %v695_v24 = vld [vmem:[%s923_s1 + $0x78] sm:$0xff]   ;;  %v50_v25 = vld [vmem:[#allocation3] sm:$0xff]  ;;  %v52_v26 = vld [vmem:[#allocation3 + $0x10] sm:$0xff] }
  0x1a   :  { %v123_v22 = vpack.c.bf16 %v101_v18, %v99_v17  ;;  %v66_v27 = vld [vmem:[#allocation3 + $0x80] sm:$0xff]  ;;  %v68_v28 = vld [vmem:[#allocation3 + $0x90] sm:$0xff]  ;;  %v55_v29 = vld [vmem:[#allocation3 + $0x28] sm:$0xff]  ;;  %v82_v34 = vmul.f32 0.003921569, %v50_v25 }
  0x1b   :  { %306 = vmatprep.mubr.bf16.mxu0 %v115_v20  ;;  %v57_v30 = vld [vmem:[#allocation3 + $0x38] sm:$0xff]  ;;  %v71_v31 = vld [vmem:[#allocation3 + $0xa8] sm:$0xff]  ;;  %v84_v35 = vmul.f32 0.003921569, %v52_v26  ;;  %v98_v36 = vmul.f32 0.003921569, %v66_v27 }
  0x1c   :  { %602 = vmatpush3.bf16.msra.mxu0 %v686_v5  ;;  %671 = vmatpush3.bf16.msra.mxu1 %v686_v5  ;;  %v73_v32 = vld [vmem:[#allocation3 + $0xb8] sm:$0xff]  ;;  %v100_v37 = vmul.f32 0.003921569, %v68_v28  ;;  %v87_v38 = vmul.f32 0.003921569, %v55_v29  ;;  %v54_v44 = vld [vmem:[#allocation3 + $0x20] sm:$0xff] }
  0x1d   :  { %603 = vmatprep.subr.bf16.mxu0 %v687_v6  ;;  %664 = vmatprep.subr.bf16.mxu1 %v687_v6  ;;  %v696_v33 = vld [vmem:[%s923_s1 + $0x38] sm:$0xff]   ;;  %v89_v39 = vmul.f32 0.003921569, %v57_v30  ;;  %v103_v40 = vmul.f32 0.003921569, %v71_v31  ;;  %v114_v42 = vpack.c.bf16 %v84_v35, %v82_v34  ;;  %v56_v45 = vld [vmem:[#allocation3 + $0x30] sm:$0xff] }
  0x1e   :  { %338 = vmatprep.mubr.bf16.mxu1 %v123_v22  ;;  %v105_v41 = vmul.f32 0.003921569, %v73_v32  ;;  %v122_v43 = vpack.c.bf16 %v100_v37, %v98_v36  ;;  %v70_v48 = vld [vmem:[#allocation3 + $0xa0] sm:$0xff]  ;;  %v72_v49 = vld [vmem:[#allocation3 + $0xb0] sm:$0xff]  ;;  %v59_v50 = vld [vmem:[#allocation3 + $0x48] sm:$0xff]  ;;  %v724_v32 = vmov 0.0  }
  0x1f   :  { %v117_v46 = vpack.c.bf16 %v89_v39, %v87_v38  ;;  %v61_v51 = vld [vmem:[#allocation3 + $0x58] sm:$0xff]  ;;  %v75_v52 = vld [vmem:[#allocation3 + $0xc8] sm:$0xff]  ;;  %v86_v54 = vmul.f32 0.003921569, %v54_v44  ;;  %v88_v55 = vmul.f32 0.003921569, %v56_v45 }
  0x20   :  { %604 = vmatpush3.bf16.msra.mxu0 %v688_v7  ;;  %672 = vmatpush3.bf16.msra.mxu1 %v688_v7  ;;  %v125_v47 = vpack.c.bf16 %v105_v41, %v103_v40  ;;  %v77_v53 = vld [vmem:[#allocation3 + $0xd8] sm:$0xff]  ;;  %v102_v56 = vmul.f32 0.003921569, %v70_v48  ;;  %v104_v57 = vmul.f32 0.003921569, %v72_v49  ;;  %v58_v0 = vld [vmem:[#allocation3 + $0x40] sm:$0xff] }
  0x21   :  { %605 = vmatprep.subr.bf16.mxu0 %v689_v8  ;;  %665 = vmatprep.subr.bf16.mxu1 %v689_v8  ;;  %v91_v58 = vmul.f32 0.003921569, %v59_v50  ;;  %v93_v59 = vmul.f32 0.003921569, %v61_v51  ;;  %v107_v60 = vmul.f32 0.003921569, %v75_v52  ;;  %v116_v62 = vpack.c.bf16 %v88_v55, %v86_v54 }
  0x22   :  { %v109_v61 = vmul.f32 0.003921569, %v77_v53  ;;  %v124_v63 = vpack.c.bf16 %v104_v57, %v102_v56  ;;  %v60_v1 = vld [vmem:[#allocation3 + $0x50] sm:$0xff]  ;;  %v74_v4 = vld [vmem:[#allocation3 + $0xc0] sm:$0xff]  ;;  %v63_v6 = vld [vmem:[#allocation3 + $0x68] sm:$0xff]  ;;  %34 = vst.msk [vmem:[#allocation2] sm:$0xff] %vm33_vm0, %v724_v32 }
  0x23   :  { %v119_v2 = vpack.c.bf16 %v93_v59, %v91_v58  ;;  %v76_v5 = vld [vmem:[#allocation3 + $0xd0] sm:$0xff]  ;;  %v65_v7 = vld [vmem:[#allocation3 + $0x78] sm:$0xff]  ;;  %v79_v8 = vld [vmem:[#allocation3 + $0xe8] sm:$0xff]  ;;  %v92_v11 = vmul.f32 0.003921569, %v60_v1  ;;  %35 = vst.msk [vmem:[#allocation2 + $0x8] sm:$0xff] %vm33_vm0, %v724_v32 }
  0x24   :  { %606 = vmatpush3.bf16.msra.mxu0 %v690_v9  ;;  %673 = vmatpush3.bf16.msra.mxu1 %v690_v9  ;;  %v127_v3 = vpack.c.bf16 %v109_v61, %v107_v60  ;;  %v81_v9 = vld [vmem:[#allocation3 + $0xf8] sm:$0xff]  ;;  %v106_v12 = vmul.f32 0.003921569, %v74_v4  ;;  %v108_v13 = vmul.f32 0.003921569, %v76_v5  ;;  %v62_v20 = vld [vmem:[#allocation3 + $0x60] sm:$0xff] }
  0x25   :  { %607 = vmatprep.subr.bf16.mxu0 %v691_v10  ;;  %666 = vmatprep.subr.bf16.mxu1 %v691_v10  ;;  %v90_v10 = vmul.f32 0.003921569, %v58_v0  ;;  %v95_v14 = vmul.f32 0.003921569, %v63_v6  ;;  %v97_v15 = vmul.f32 0.003921569, %v65_v7 }
  0x26   :  { %v111_v16 = vmul.f32 0.003921569, %v79_v8  ;;  %v113_v17 = vmul.f32 0.003921569, %v81_v9  ;;  %v80_v25 = vld [vmem:[#allocation3 + $0xf0] sm:$0xff]  ;;  %36 = vst.msk [vmem:[#allocation2 + $0x10] sm:$0xff] %vm33_vm0, %v724_v32 }
  0x27   :  { %v118_v18 = vpack.c.bf16 %v92_v11, %v90_v10  ;;  %v94_v26 = vmul.f32 0.003921569, %v62_v20  ;;  %v112_v29 = vmul.f32 0.003921569, %v80_v25  ;;  %37 = vst.msk [vmem:[#allocation2 + $0x18] sm:$0xff] %vm33_vm0, %v724_v32  ;;  %38 = vst.msk [vmem:[#allocation2 + $0x20] sm:$0xff] %vm33_vm0, %v724_v32 }
  0x28   :  { %608 = vmatpush3.bf16.msra.mxu0 %v692_v19  ;;  %674 = vmatpush3.bf16.msra.mxu1 %v692_v19  ;;  %v126_v19 = vpack.c.bf16 %v108_v13, %v106_v12  ;;  %v129_v22 = vpack.c.bf16 %v113_v17, %v111_v16  ;;  %39 = vst.msk [vmem:[#allocation2 + $0x28] sm:$0xff] %vm33_vm0, %v724_v32  ;;  %40 = vst.msk [vmem:[#allocation2 + $0x30] sm:$0xff] %vm33_vm0, %v724_v32 }
  0x29   :  { %609 = vmatprep.subr.bf16.mxu0 %v693_v21  ;;  %667 = vmatprep.subr.bf16.mxu1 %v693_v21  ;;  %v121_v21 = vpack.c.bf16 %v97_v15, %v95_v14  ;;  %41 = vst.msk [vmem:[#allocation2 + $0x38] sm:$0xff] %vm33_vm0, %v724_v32  ;;  %42 = vst.msk [vmem:[#allocation2 + $0x40] sm:$0xff] %vm33_vm0, %v724_v32  ;;  %v162_v35 = vld [vmem:[#allocation2] sm:$0xff] }
  0x2a   :  { %43 = vst.msk [vmem:[#allocation2 + $0x48] sm:$0xff] %vm33_vm0, %v724_v32  ;;  %44 = vst.msk [vmem:[#allocation2 + $0x50] sm:$0xff] %vm33_vm0, %v724_v32 }
  0x2b   :  { %45 = vst.msk [vmem:[#allocation2 + $0x58] sm:$0xff] %vm33_vm0, %v724_v32  ;;  %46 = vst.msk [vmem:[#allocation2 + $0x60] sm:$0xff] %vm33_vm0, %v724_v32 }
  0x2c   :  { %610 = vmatpush3.bf16.msra.mxu0 %v694_v23  ;;  %675 = vmatpush3.bf16.msra.mxu1 %v694_v23  ;;  %v64_v23 = vld [vmem:[#allocation3 + $0x70] sm:$0xff]  ;;  %47 = vst.msk [vmem:[#allocation2 + $0x68] sm:$0xff] %vm33_vm0, %v724_v32  ;;  %48 = vst.msk [vmem:[#allocation2 + $0x70] sm:$0xff] %vm33_vm0, %v724_v32 }
  0x2d   :  { %611 = vmatprep.subr.bf16.mxu0 %v695_v24  ;;  %668 = vmatprep.subr.bf16.mxu1 %v695_v24  ;;  %v78_v24 = vld [vmem:[#allocation3 + $0xe0] sm:$0xff]  ;;  %v96_v27 = vmul.f32 0.003921569, %v64_v23  ;;  %49 = vst.msk [vmem:[#allocation2 + $0x78] sm:$0xff] %vm33_vm0, %v724_v32  ;;  %v164_v55 = vld [vmem:[#allocation2 + $0x10] sm:$0xff] }
  0x2e   :  { %v110_v28 = vmul.f32 0.003921569, %v78_v24  ;;  %v165_v0 = vld [vmem:[#allocation2 + $0x18] sm:$0xff] }
  0x2f   :  { %v120_v30 = vpack.c.bf16 %v96_v27, %v94_v26 }
  0x30   :  { %612 = vmatpush3.bf16.msra.mxu0 %v696_v33  ;;  %676 = vmatpush3.bf16.msra.mxu1 %v696_v33  ;;  %v128_v31 = vpack.c.bf16 %v112_v29, %v110_v28  ;;  %v170_v37 = vld [vmem:[#allocation2 + $0x40] sm:$0xff] }
  0x31   :  { %v171_v45 = vld [vmem:[#allocation2 + $0x48] sm:$0xff]  ;;  %v172_v57 = vld [vmem:[#allocation2 + $0x50] sm:$0xff]  ;;  %v166_v28 = vld [vmem:[#allocation2 + $0x20] sm:$0xff] }
  0x32   :  { %v174_v29 = vld [vmem:[#allocation2 + $0x60] sm:$0xff] }
  0x33   :  { %307 = vmatmul.mubr.bf16.vlgmr.msra.gmra.mrb[0].mxu0 %v114_v42  ;;  %339 = vmatmul.mubr.bf16.vlgmr.msra.gmra.mrb[0].mxu1 %v122_v43  ;;  %v163_v43 = vld [vmem:[#allocation2 + $0x8] sm:$0xff] }
  0x34   :  { %314 = vmatprep.mubr.bf16.mxu0 %v117_v46  ;;  %346 = vmatprep.mubr.bf16.mxu1 %v125_v47 }
  0x3b   :  { %315 = vmatmul.mubr.bf16.gmra.mrb[4].mxu0 %v116_v62  ;;  %347 = vmatmul.mubr.bf16.gmra.mrb[4].mxu1 %v124_v63  ;;  %v828_v63 = vld [vmem:[%s924_s2] ss:$0 sm:$0xff] }
  0x3c   :  { %322 = vmatprep.mubr.bf16.mxu0 %v119_v2  ;;  %354 = vmatprep.mubr.bf16.mxu1 %v127_v3  ;;  %v173_v2 = vld [vmem:[#allocation2 + $0x58] sm:$0xff] }
  0x43   :  { %323 = vmatmul.mubr.bf16.gmra.mrb[8].mxu0 %v118_v18  ;;  %355 = vmatmul.mubr.bf16.gmra.mrb[8].mxu1 %v126_v19 }
  0x44   :  { %330 = vmatprep.mubr.bf16.mxu0 %v121_v21  ;;  %362 = vmatprep.mubr.bf16.mxu1 %v129_v22 }
  0x4b   :  { %331 = vmatmul.mubr.bf16.gmra.mrb[12].mxu0 %v120_v30  ;;  %363 = vmatmul.mubr.bf16.gmra.mrb[12].mxu1 %v128_v31 }
 0x106   :  { %v613_v33 = vpop.f32.mrb[0].mxu0  ;;  %v637_v34 = vpop.f32.mrb[0].mxu1 }
 0x107   :  { %v614_v36 = vpop.f32.mrb[1].mxu0  ;;  %v638_v38 = vpop.f32.mrb[1].mxu1 }
 0x108   :  { %v615_v39 = vadd.f32 %v614_v36, %v613_v33  ;;  %v639_v40 = vadd.f32 %v638_v38, %v637_v34  ;;  %v616_v41 = vpop.f32.mrb[2].mxu0  ;;  %v640_v42 = vpop.f32.mrb[2].mxu1  ;;  %v167_v34 = vld [vmem:[#allocation2 + $0x28] sm:$0xff] }
 0x109   :  { %v617_v44 = vpop.f32.mrb[3].mxu0  ;;  %v641_v46 = vpop.f32.mrb[3].mxu1  ;;  %v175_v36 = vld [vmem:[#allocation2 + $0x68] sm:$0xff] }
 0x10a   :  { %v371_v47 = vadd.f32 %v615_v39, %v162_v35  ;;  %v379_v48 = vadd.f32 %v639_v40, %v170_v37  ;;  %v618_v49 = vadd.f32 %v617_v44, %v616_v41  ;;  %v642_v50 = vadd.f32 %v641_v46, %v640_v42 }
 0x10c   :  { %388 = vst.msk [vmem:[#allocation2] sm:$0xff] %vm33_vm0, %v371_v47  ;;  %396 = vst.msk [vmem:[#allocation2 + $0x40] sm:$0xff] %vm33_vm0, %v379_v48  ;;  %v372_v51 = vadd.f32 %v618_v49, %v163_v43  ;;  %v380_v52 = vadd.f32 %v642_v50, %v171_v45 }
 0x10e   :  { %389 = vst.msk [vmem:[#allocation2 + $0x8] sm:$0xff] %vm33_vm0, %v372_v51  ;;  %397 = vst.msk [vmem:[#allocation2 + $0x48] sm:$0xff] %vm33_vm0, %v380_v52  ;;  %v619_v53 = vpop.f32.mrb[4].mxu0  ;;  %v643_v54 = vpop.f32.mrb[4].mxu1 }
 0x10f   :  { %v620_v56 = vpop.f32.mrb[5].mxu0  ;;  %v644_v58 = vpop.f32.mrb[5].mxu1 }
 0x110   :  { %v621_v59 = vadd.f32 %v620_v56, %v619_v53  ;;  %v645_v60 = vadd.f32 %v644_v58, %v643_v54  ;;  %v622_v61 = vpop.f32.mrb[6].mxu0  ;;  %v646_v62 = vpop.f32.mrb[6].mxu1 }
 0x111   :  { %v623_v1 = vpop.f32.mrb[7].mxu0  ;;  %v647_v3 = vpop.f32.mrb[7].mxu1 }
 0x112   :  { %v373_v4 = vadd.f32 %v621_v59, %v164_v55  ;;  %v381_v5 = vadd.f32 %v645_v60, %v172_v57  ;;  %v624_v6 = vadd.f32 %v623_v1, %v622_v61  ;;  %v648_v7 = vadd.f32 %v647_v3, %v646_v62  ;;  %v168_v1 = vld [vmem:[#allocation2 + $0x30] sm:$0xff] }
 0x113   :  { %v407_v8 = vld [vmem:[#allocation2] sm:$0xff] }
 0x114   :  { %v415_v9 = vld [vmem:[#allocation2 + $0x40] sm:$0xff]  ;;  %v430_v10 = vadd.f32 %v828_v63, %v407_v8  ;;  %390 = vst.msk [vmem:[#allocation2 + $0x10] sm:$0xff] %vm33_vm0, %v373_v4  ;;  %398 = vst.msk [vmem:[#allocation2 + $0x50] sm:$0xff] %vm33_vm0, %v381_v5  ;;  %v374_v12 = vadd.f32 %v624_v6, %v165_v0  ;;  %v382_v13 = vadd.f32 %v648_v7, %v173_v2  ;;  %v176_v2 = vld [vmem:[#allocation2 + $0x70] sm:$0xff] }
 0x115   :  { %v438_v11 = vadd.f32 %v828_v63, %v415_v9  ;;  %v408_v14 = vld [vmem:[#allocation2 + $0x8] sm:$0xff]  ;;  %v169_v7 = vld [vmem:[#allocation2 + $0x38] sm:$0xff] }
 0x116   :  { %v416_v15 = vld [vmem:[#allocation2 + $0x48] sm:$0xff]  ;;  %v446_v16 = vmax.f32 %v430_v10, 0.0  ;;  %v431_v18 = vadd.f32 %v828_v63, %v408_v14  ;;  %391 = vst.msk [vmem:[#allocation2 + $0x18] sm:$0xff] %vm33_vm0, %v374_v12  ;;  %399 = vst.msk [vmem:[#allocation2 + $0x58] sm:$0xff] %vm33_vm0, %v382_v13  ;;  %v625_v20 = vpop.f32.mrb[8].mxu0  ;;  %v649_v21 = vpop.f32.mrb[8].mxu1 }
 0x117   :  { %v454_v17 = vmax.f32 %v438_v11, 0.0  ;;  %v439_v19 = vadd.f32 %v828_v63, %v416_v15  ;;  %v626_v22 = vpop.f32.mrb[9].mxu0  ;;  %v650_v23 = vpop.f32.mrb[9].mxu1  ;;  %v177_v9 = vld [vmem:[#allocation2 + $0x78] sm:$0xff] }
 0x118   :  { %v581_v24 = vpack.c.bf16 %v446_v16, %v446_v16  ;;  %v447_v26 = vmax.f32 %v431_v18, 0.0  ;;  %v628_v30 = vpop.f32.mrb[10].mxu0  ;;  %v652_v31 = vpop.f32.mrb[10].mxu1  ;;  %v627_v32 = vadd.f32 %v626_v22, %v625_v20  ;;  %v651_v33 = vadd.f32 %v650_v23, %v649_v21 }
 0x119   :  { %v589_v25 = vpack.c.bf16 %v454_v17, %v454_v17  ;;  %v455_v27 = vmax.f32 %v439_v19, 0.0  ;;  %v629_v35 = vpop.f32.mrb[11].mxu0  ;;  %v653_v37 = vpop.f32.mrb[11].mxu1 }
 0x11a   :  { %527 = vst.msk [vmem:[%s925_s3] sm:$0xf] %vm526_vm1, %v581_v24  ;;  %v582_v38 = vpack.c.bf16 %v447_v26, %v447_v26  ;;  %v630_v40 = vadd.f32 %v629_v35, %v628_v30  ;;  %v654_v41 = vadd.f32 %v653_v37, %v652_v31  ;;  %v375_v44 = vadd.f32 %v627_v32, %v166_v28 }
 0x11b   :  { %535 = vst.msk [vmem:[%s925_s3 + $0x20] sm:$0xf] %vm526_vm1, %v589_v25  ;;  %v590_v39 = vpack.c.bf16 %v455_v27, %v455_v27  ;;  %v409_v42 = vld [vmem:[#allocation2 + $0x10] sm:$0xff]  ;;  %v383_v45 = vadd.f32 %v651_v33, %v174_v29 }
 0x11c   :  { %v417_v43 = vld [vmem:[#allocation2 + $0x50] sm:$0xff]  ;;  %528 = vst.msk [vmem:[%s925_s3 + $0x4] sm:$0xf] %vm526_vm1, %v582_v38  ;;  %v432_v46 = vadd.f32 %v828_v63, %v409_v42  ;;  %v376_v48 = vadd.f32 %v630_v40, %v167_v34  ;;  %v384_v49 = vadd.f32 %v654_v41, %v175_v36 }
 0x11d   :  { %536 = vst.msk [vmem:[%s925_s3 + $0x24] sm:$0xf] %vm526_vm1, %v590_v39  ;;  %v440_v47 = vadd.f32 %v828_v63, %v417_v43  ;;  %v410_v50 = vld [vmem:[#allocation2 + $0x18] sm:$0xff] }
 0x11e   :  { %v418_v51 = vld [vmem:[#allocation2 + $0x58] sm:$0xff]  ;;  %392 = vst.msk [vmem:[#allocation2 + $0x20] sm:$0xff] %vm33_vm0, %v375_v44  ;;  %400 = vst.msk [vmem:[#allocation2 + $0x60] sm:$0xff] %vm33_vm0, %v383_v45  ;;  %v448_v52 = vmax.f32 %v432_v46, 0.0  ;;  %v433_v54 = vadd.f32 %v828_v63, %v410_v50  ;;  %v631_v56 = vpop.f32.mrb[12].mxu0  ;;  %v655_v57 = vpop.f32.mrb[12].mxu1 }
 0x11f   :  { %v456_v53 = vmax.f32 %v440_v47, 0.0  ;;  %v441_v55 = vadd.f32 %v828_v63, %v418_v51  ;;  %393 = vst.msk [vmem:[#allocation2 + $0x28] sm:$0xff] %vm33_vm0, %v376_v48  ;;  %401 = vst.msk [vmem:[#allocation2 + $0x68] sm:$0xff] %vm33_vm0, %v384_v49  ;;  %v632_v58 = vpop.f32.mrb[13].mxu0  ;;  %v656_v59 = vpop.f32.mrb[13].mxu1 }
 0x120   :  { %v583_v60 = vpack.c.bf16 %v448_v52, %v448_v52  ;;  %v449_v62 = vmax.f32 %v433_v54, 0.0  ;;  %v634_v3 = vpop.f32.mrb[14].mxu0  ;;  %v658_v4 = vpop.f32.mrb[14].mxu1  ;;  %v633_v5 = vadd.f32 %v632_v58, %v631_v56  ;;  %v657_v6 = vadd.f32 %v656_v59, %v655_v57 }
 0x121   :  { %v591_v61 = vpack.c.bf16 %v456_v53, %v456_v53  ;;  %v457_v0 = vmax.f32 %v441_v55, 0.0  ;;  %v635_v8 = vpop.f32.mrb[15].mxu0  ;;  %v659_v10 = vpop.f32.mrb[15].mxu1 }
 0x122   :  { %529 = vst.msk [vmem:[%s925_s3 + $0x8] sm:$0xf] %vm526_vm1, %v583_v60  ;;  %v584_v11 = vpack.c.bf16 %v449_v62, %v449_v62  ;;  %v636_v13 = vadd.f32 %v635_v8, %v634_v3  ;;  %v660_v14 = vadd.f32 %v659_v10, %v658_v4  ;;  %v377_v15 = vadd.f32 %v633_v5, %v168_v1 }
 0x123   :  { %537 = vst.msk [vmem:[%s925_s3 + $0x28] sm:$0xf] %vm526_vm1, %v591_v61  ;;  %v592_v12 = vpack.c.bf16 %v457_v0, %v457_v0  ;;  %v385_v16 = vadd.f32 %v657_v6, %v176_v2 }
 0x124   :  { %530 = vst.msk [vmem:[%s925_s3 + $0xc] sm:$0xf] %vm526_vm1, %v584_v11  ;;  %v378_v19 = vadd.f32 %v636_v13, %v169_v7  ;;  %v386_v20 = vadd.f32 %v660_v14, %v177_v9 }
 0x125   :  { %538 = vst.msk [vmem:[%s925_s3 + $0x2c] sm:$0xf] %vm526_vm1, %v592_v12  ;;  %v411_v17 = vld [vmem:[#allocation2 + $0x20] sm:$0xff] }
 0x126   :  { %v419_v18 = vld [vmem:[#allocation2 + $0x60] sm:$0xff]  ;;  %v434_v21 = vadd.f32 %v828_v63, %v411_v17  ;;  %v412_v23 = vld [vmem:[#allocation2 + $0x28] sm:$0xff]  ;;  %394 = vst.msk [vmem:[#allocation2 + $0x30] sm:$0xff] %vm33_vm0, %v377_v15  ;;  %402 = vst.msk [vmem:[#allocation2 + $0x70] sm:$0xff] %vm33_vm0, %v385_v16 }
 0x127   :  { %v442_v22 = vadd.f32 %v828_v63, %v419_v18  ;;  %v420_v24 = vld [vmem:[#allocation2 + $0x68] sm:$0xff]  ;;  %v435_v25 = vadd.f32 %v828_v63, %v412_v23  ;;  %395 = vst.msk [vmem:[#allocation2 + $0x38] sm:$0xff] %vm33_vm0, %v378_v19  ;;  %403 = vst.msk [vmem:[#allocation2 + $0x78] sm:$0xff] %vm33_vm0, %v386_v20 }
 0x128   :  { %v443_v26 = vadd.f32 %v828_v63, %v420_v24  ;;  %v450_v27 = vmax.f32 %v434_v21, 0.0 }
 0x129   :  { %v458_v28 = vmax.f32 %v442_v22, 0.0  ;;  %v451_v29 = vmax.f32 %v435_v25, 0.0 }
 0x12a   :  { %v459_v30 = vmax.f32 %v443_v26, 0.0  ;;  %v585_v31 = vpack.c.bf16 %v450_v27, %v450_v27 }
 0x12b   :  { %v593_v32 = vpack.c.bf16 %v458_v28, %v458_v28  ;;  %v586_v33 = vpack.c.bf16 %v451_v29, %v451_v29 }
 0x12c   :  { %v594_v34 = vpack.c.bf16 %v459_v30, %v459_v30  ;;  %531 = vst.msk [vmem:[%s925_s3 + $0x10] sm:$0xf] %vm526_vm1, %v585_v31 }
 0x12d   :  { %539 = vst.msk [vmem:[%s925_s3 + $0x30] sm:$0xf] %vm526_vm1, %v593_v32  ;;  %532 = vst.msk [vmem:[%s925_s3 + $0x14] sm:$0xf] %vm526_vm1, %v586_v33  ;;  %v413_v35 = vld [vmem:[#allocation2 + $0x30] sm:$0xff] }
 0x12e   :  { %540 = vst.msk [vmem:[%s925_s3 + $0x34] sm:$0xf] %vm526_vm1, %v594_v34  ;;  %v421_v36 = vld [vmem:[#allocation2 + $0x70] sm:$0xff]  ;;  %v436_v37 = vadd.f32 %v828_v63, %v413_v35  ;;  %v414_v39 = vld [vmem:[#allocation2 + $0x38] sm:$0xff] }
 0x12f   :  { %v444_v38 = vadd.f32 %v828_v63, %v421_v36  ;;  %v422_v40 = vld [vmem:[#allocation2 + $0x78] sm:$0xff]  ;;  %v437_v41 = vadd.f32 %v828_v63, %v414_v39 }
 0x130   :  { %v445_v42 = vadd.f32 %v828_v63, %v422_v40  ;;  %v452_v43 = vmax.f32 %v436_v37, 0.0 }
 0x131   :  { %v460_v44 = vmax.f32 %v444_v38, 0.0  ;;  %v453_v45 = vmax.f32 %v437_v41, 0.0 }
 0x132   :  { %v461_v46 = vmax.f32 %v445_v42, 0.0  ;;  %v587_v47 = vpack.c.bf16 %v452_v43, %v452_v43 }
 0x133   :  { %v595_v48 = vpack.c.bf16 %v460_v44, %v460_v44  ;;  %v588_v49 = vpack.c.bf16 %v453_v45, %v453_v45 }
 0x134   :  { %v596_v50 = vpack.c.bf16 %v461_v46, %v461_v46  ;;  %533 = vst.msk [vmem:[%s925_s3 + $0x18] sm:$0xf] %vm526_vm1, %v587_v47 }
 0x135   :  { %541 = vst.msk [vmem:[%s925_s3 + $0x38] sm:$0xf] %vm526_vm1, %v595_v48  ;;  %534 = vst.msk [vmem:[%s925_s3 + $0x1c] sm:$0xf] %vm526_vm1, %v588_v49 }
 0x136   :  { %542 = vst.msk [vmem:[%s925_s3 + $0x3c] sm:$0xf] %vm526_vm1, %v596_v50 }
 0x137   :  { %547 = vsyncpa [#allocation4], 1 }

</bundles_post_ra>
